<compile_context>
chip_gen: v6e
topology: v6e:2x2x1
jax: 0.10.0
libtpu: 0.0.40
codegen_flags: <defaults>
</compile_context>

<pallas_src>
import functools

import jax
import jax.numpy as jnp
from jax.experimental import pallas as pl
from jax.experimental.pallas import tpu as pltpu

_BN_EPS = 1e-5


def _cdiv(a, b):
    return (a + b - 1) // b


def _round_up(a, b):
    return _cdiv(a, b) * b


def _make_attention_kernel(use_mxu_t):
    def kernel(x_ref, g_ref, wx_ref, wg_ref, b_ref, wt_ref, bt_ref, o_ref):
        """One (spatial-tile, batch) step.

        x_ref: (Cx, T)   g_ref: (Cg, T)   o_ref: (Cx, T)
        wx_ref: (Ct, Cx) wg_ref: (Ct, Cg) b_ref: (Ct, 1)  (= bx + bg, f32)
        wt_ref: (1, Ct) if use_mxu_t else (Ct, 1)   bt_ref: (1, 1)
        """
        x = x_ref[...]                                    # native dtype tile
        g = g_ref[...]

        # 1x1 convs over channels == (Cout, Cin) @ (Cin, T) MXU matmuls in the
        # inputs' native dtype with f32 accumulation.
        x_out = jnp.dot(wx_ref[...], x, preferred_element_type=jnp.float32)
        g_out = jnp.dot(wg_ref[...], g, preferred_element_type=jnp.float32)
        h = jnp.maximum(x_out + g_out + b_ref[...], 0.0)  # (Ct, T) f32

        if use_mxu_t:
            # M=1 matmul on the otherwise idle MXU frees VPU/XLU slots.
            logits = jnp.dot(wt_ref[...], h,
                             preferred_element_type=jnp.float32) + bt_ref[...]
        else:
            # Tiny Ct: elementwise multiply + sublane reduce is cheaper than
            # pushing an M=1 matmul through the MXU.
            logits = jnp.sum(h * wt_ref[...], axis=0, keepdims=True) + bt_ref[...]

        attn = jax.nn.sigmoid(logits)                     # (1, T) f32

        # Gate in f32 (implicit promotion: attn is f32), cast the product only.
        o_ref[...] = (x * attn).astype(o_ref.dtype)

    return kernel


def _fold_conv_bn(w, b, gamma, beta, mean, var, eps=_BN_EPS):
    """Fold inference-mode BatchNorm into the preceding 1x1 conv."""
    w = jnp.asarray(w, jnp.float32)
    s = jnp.asarray(gamma, jnp.float32) / jnp.sqrt(jnp.asarray(var, jnp.float32) + eps)
    b0 = jnp.asarray(b, jnp.float32) if b is not None else jnp.zeros((w.shape[0],), jnp.float32)
    w_f = w * s[:, None]
    b_f = s * (b0 - jnp.asarray(mean, jnp.float32)) + jnp.asarray(beta, jnp.float32)
    return w_f, b_f


def _vmem_limit_bytes():
    """Generation-aware scoped-VMEM limit (~75% of physical per-core VMEM)."""
    try:
        cap = pltpu.get_tpu_info().vmem_capacity_bytes
    except Exception:
        cap = 64 * 1024 * 1024   # conservative (v7x physical)
    return max(32 * 1024 * 1024, (cap * 3) // 4)


def _pick_hw_tile(hw, n, cx, cg, ct, itemsize, budget_bytes):
    """Largest lane-dense spatial tile whose *true* per-step VMEM footprint
    (double-buffered x/g/out tiles + f32 intermediates) fits `budget_bytes`,
    while minimizing padded work and keeping >= 2 grid steps when possible.
    Returns (tile, padded_hw)."""
    hw_pad = _round_up(max(hw, 1), 128)
    candidates = (32768, 16384, 8192, 4096, 2048, 1024, 512, 256, 128)

    def footprint(t):
        io = 2 * (2 * cx + cg) * t * itemsize      # double-buffered x, g, out tiles
        f32_tmp = (3 * ct + 4) * t * 4             # x_out, g_out, h (+ attn/logit rows)
        return io + f32_tmp

    feasible = [t for t in candidates if t <= hw_pad and footprint(t) <= budget_bytes]
    if not feasible:
        feasible = [128]

    def key(t):
        steps = _cdiv(hw_pad, t)
        padded = steps * t
        # With N == 1 prefer >= 2 spatial steps so v7x can shard across both cores.
        single_step_penalty = 1 if (n == 1 and steps < 2) else 0
        return (single_step_penalty, padded, -t)

    t = min(feasible, key=key)
    return t, _cdiv(hw_pad, t) * t


def attention_block(x, g, params):
    """x: (N, Cx, H, W); g: (N, Cg, H, W) with identical N, H, W.

    params: dict with keys "x", "g", "t"; each a dict of
      w: (Cout, Cin), b: (Cout,) or None, gamma/beta/mean/var: (Cout,)
    (torch.nn.Conv2d 1x1 weights squeezed to 2-D + BatchNorm2d eval stats).
    """
    N, Cx, H, W = x.shape
    Ng, Cg, Hg, Wg = g.shape
    assert (N, H, W) == (Ng, Hg, Wg), "x and g must share batch and spatial dims"
    HW = H * W
    Ct = params["x"]["w"].shape[0]

    wx, bx = _fold_conv_bn(**params["x"])
    wg, bg = _fold_conv_bn(**params["g"])
    wt, bt = _fold_conv_bn(**params["t"])

    # Feed the MXU in the input's native dtype (bf16 stays bf16); biases stay f32.
    compute_dtype = x.dtype
    wx = wx.astype(compute_dtype)
    wg = wg.astype(compute_dtype)
    b_comb = (bx + bg).reshape(Ct, 1)            # combined branch biases, f32
    bt = bt.reshape(1, 1)

    use_mxu_t = Ct >= 32
    wt = wt.reshape(1, Ct) if use_mxu_t else wt.reshape(Ct, 1)   # f32

    x3 = x.reshape(N, Cx, HW)
    g3 = g.reshape(N, Cg, HW)

    vmem_limit = _vmem_limit_bytes()
    # Resident weight/bias footprint (double-buffered) + scratch margin.
    weight_bytes = 2 * ((Ct * Cx + Ct * Cg) * compute_dtype.itemsize
                        + (2 * Ct + 2) * 4)
    tile_budget = max(4 * 1024 * 1024, vmem_limit - weight_bytes - 4 * 1024 * 1024)

    hw_tile, hw_total = _pick_hw_tile(HW, N, Cx, Cg, Ct,
                                      compute_dtype.itemsize, tile_budget)
    if hw_total != HW:
        pad = hw_total - HW
        x3 = jnp.pad(x3, ((0, 0), (0, 0), (0, pad)))
        g3 = jnp.pad(g3, ((0, 0), (0, 0), (0, pad)))

    # Larger-extent (spatial) axis first so megacore sharding picks it up.
    grid = (hw_total // hw_tile, N)

    def const_spec(shape):
        # Weights/biases: full-array blocks with a constant index_map so they
        # are DMA'd once and never re-fetched across grid steps.
        return pl.BlockSpec(shape, lambda s, n: (0, 0))

    kernel = _make_attention_kernel(use_mxu_t)

    out = pl.pallas_call(
        kernel,
        out_shape=jax.ShapeDtypeStruct((N, Cx, hw_total), x.dtype),
        grid=grid,
        in_specs=[
            pl.BlockSpec((None, Cx, hw_tile), lambda s, n: (n, 0, s)),   # x
            pl.BlockSpec((None, Cg, hw_tile), lambda s, n: (n, 0, s)),   # g
            const_spec((Ct, Cx)),                                        # wx
            const_spec((Ct, Cg)),                                        # wg
            const_spec((Ct, 1)),                                         # bx + bg
            const_spec(wt.shape),                                        # wt
            const_spec((1, 1)),                                          # bt
        ],
        out_specs=pl.BlockSpec((None, Cx, hw_tile), lambda s, n: (n, 0, s)),
        compiler_params=pltpu.CompilerParams(
            dimension_semantics=("parallel", "parallel"),
            vmem_limit_bytes=int(vmem_limit),
        ),
    )(x3, g3, wx, wg, b_comb, wt, bt)

    if hw_total != HW:
        out = out[:, :, :HW]
    return out.reshape(N, Cx, H, W)


def _reference(x, g, params, eps=_BN_EPS):
    """Pure-JAX reference of the PyTorch forward (BN in eval mode)."""
    def conv_bn(inp, p):
        w = p["w"].astype(jnp.float32)
        y = jnp.einsum("oc,nchw->nohw", w, inp.astype(jnp.float32),
                       precision=jax.lax.Precision.HIGHEST)
        if p["b"] is not None:
            y = y + p["b"][None, :, None, None]
        s = p["gamma"] / jnp.sqrt(p["var"] + eps)
        return (s[None, :, None, None] * (y - p["mean"][None, :, None, None])
                + p["beta"][None, :, None, None])

    x_out = conv_bn(x, params["x"])
    g_out = conv_bn(g, params["g"])
    h = jnp.maximum(x_out + g_out, 0.0)
    attn = jax.nn.sigmoid(conv_bn(h, params["t"]))
    return (x.astype(jnp.float32) * attn).astype(x.dtype)


def _make_branch(k, cout, cin, wscale=0.5):
    kw, kb, kgm, kbe, kmu, kvr = jax.random.split(k, 6)
    return dict(
        w=jax.random.normal(kw, (cout, cin), jnp.float32) * wscale,
        b=jax.random.normal(kb, (cout,), jnp.float32) * 0.1,          # use_bias=True
        gamma=1.0 + 0.2 * jax.random.normal(kgm, (cout,), jnp.float32),
        beta=0.1 * jax.random.normal(kbe, (cout,), jnp.float32),
        mean=0.1 * jax.random.normal(kmu, (cout,), jnp.float32),
        var=jax.random.uniform(kvr, (cout,), jnp.float32, minval=0.5, maxval=1.5),
    )


if __name__ == "__main__":
    key = jax.random.PRNGKey(0)
    ks = jax.random.split(key, 12)

    # ---- Test 1: small f32 config (VPU t-path), HW multiple of 128 ----
    N, Cx, Cg, Ct, H, W = 2, 4, 8, 4, 16, 16
    x = jax.random.normal(ks[0], (N, Cx, H, W), dtype=jnp.float32)
    g = jax.random.normal(ks[1], (N, Cg, H, W), dtype=jnp.float32)
    params = {
        "x": _make_branch(ks[2], Ct, Cx),
        "g": _make_branch(ks[3], Ct, Cg),
        "t": _make_branch(ks[4], 1, Ct),
    }
    out = jax.block_until_ready(attention_block(x, g, params))
    ref = _reference(x, g, params)
    assert out.shape == (N, Cx, H, W)
    assert jnp.allclose(out, ref, atol=1e-4, rtol=1e-4), (
        f"f32 mismatch, max abs err = {jnp.max(jnp.abs(out - ref))}")

    # ---- Test 2: f32, Ct=64 (MXU t-path) with HW not a multiple of 128 ----
    N2, Cx2, Cg2, Ct2, H2, W2 = 2, 8, 16, 64, 10, 10
    x2 = jax.random.normal(ks[5], (N2, Cx2, H2, W2), dtype=jnp.float32)
    g2 = jax.random.normal(ks[6], (N2, Cg2, H2, W2), dtype=jnp.float32)
    params2 = {
        "x": _make_branch(ks[7], Ct2, Cx2, wscale=0.2),
        "g": _make_branch(ks[8], Ct2, Cg2, wscale=0.2),
        "t": _make_branch(ks[9], 1, Ct2, wscale=0.2),
    }
    out2 = jax.block_until_ready(attention_block(x2, g2, params2))
    ref2 = _reference(x2, g2, params2)
    assert out2.shape == (N2, Cx2, H2, W2)
    assert jnp.allclose(out2, ref2, atol=1e-4, rtol=1e-4), (
        f"f32/MXU-t mismatch, max abs err = {jnp.max(jnp.abs(out2 - ref2))}")

    # ---- Test 3: bf16 activations through the native-dtype MXU path ----
    x_bf = x.astype(jnp.bfloat16)
    g_bf = g.astype(jnp.bfloat16)
    out_bf = jax.block_until_ready(attention_block(x_bf, g_bf, params))
    ref_bf = _reference(x_bf, g_bf, params)
    assert out_bf.dtype == jnp.bfloat16
    err_bf = jnp.max(jnp.abs(out_bf.astype(jnp.float32) - ref_bf.astype(jnp.float32)))
    assert err_bf < 0.1, f"bf16 mismatch, max abs err = {err_bf}"

    print("KERNEL_OK")
</pallas_src>

<mosaic_0001>
module attributes {stable_mosaic.version = 11 : i64} {
  func.func @kernel(%arg0: i32, %arg1: i32, %arg2: memref<1x4x256xf32, #tpu.memory_space<vmem>>, %arg3: memref<1x8x256xf32, #tpu.memory_space<vmem>>, %arg4: memref<4x4xf32, #tpu.memory_space<vmem>>, %arg5: memref<4x8xf32, #tpu.memory_space<vmem>>, %arg6: memref<4x1xf32, #tpu.memory_space<vmem>>, %arg7: memref<4x1xf32, #tpu.memory_space<vmem>>, %arg8: memref<1x1xf32, #tpu.memory_space<vmem>>, %arg9: memref<1x4x256xf32, #tpu.memory_space<vmem>>) attributes {dimension_semantics = [#tpu.dimension_semantics<parallel>, #tpu.dimension_semantics<parallel>], iteration_bounds = array<i64: 1, 2>, scalar_prefetch = 0 : i64, scratch_operands = 0 : i64, tpu.core_type = #tpu.core_type<tc>, window_params = [{transform_indices = @transform_0, window_bounds = array<i64: 1, 4, 256>}, {transform_indices = @transform_1, window_bounds = array<i64: 1, 8, 256>}, {pipeline_mode = #tpu.pipeline_mode<synchronous>, transform_indices = @transform_2, window_bounds = array<i64: 4, 4>}, {pipeline_mode = #tpu.pipeline_mode<synchronous>, transform_indices = @transform_3, window_bounds = array<i64: 4, 8>}, {pipeline_mode = #tpu.pipeline_mode<synchronous>, transform_indices = @transform_4, window_bounds = array<i64: 4, 1>}, {pipeline_mode = #tpu.pipeline_mode<synchronous>, transform_indices = @transform_5, window_bounds = array<i64: 4, 1>}, {pipeline_mode = #tpu.pipeline_mode<synchronous>, transform_indices = @transform_6, window_bounds = array<i64: 1, 1>}, {transform_indices = @transform_7, window_bounds = array<i64: 1, 4, 256>}]} {
    %c0 = arith.constant 0 : index
    %c0_0 = arith.constant 0 : index
    %c0_1 = arith.constant 0 : index
    %0 = vector.load %arg2[%c0, %c0_0, %c0_1] : memref<1x4x256xf32, #tpu.memory_space<vmem>>, vector<1x4x256xf32>
    %1 = vector.shape_cast %0 : vector<1x4x256xf32> to vector<4x256xf32>
    %c0_2 = arith.constant 0 : index
    %c0_3 = arith.constant 0 : index
    %c0_4 = arith.constant 0 : index
    %2 = vector.load %arg3[%c0_2, %c0_3, %c0_4] : memref<1x8x256xf32, #tpu.memory_space<vmem>>, vector<1x8x256xf32>
    %3 = vector.shape_cast %2 : vector<1x8x256xf32> to vector<8x256xf32>
    %c0_5 = arith.constant 0 : index
    %c0_6 = arith.constant 0 : index
    %4 = vector.load %arg4[%c0_5, %c0_6] : memref<4x4xf32, #tpu.memory_space<vmem>>, vector<4x4xf32>
    %cst = arith.constant dense<0.000000e+00> : vector<4x256xf32>
    %5 = tpu.matmul %4, %1, %cst {dimension_numbers = #tpu.dot_dimension_numbers<[1], [0], [0], [1], [0, 0, 1, 1], [], []>} : vector<4x4xf32>, vector<4x256xf32>, vector<4x256xf32> -> vector<4x256xf32>
    %c0_7 = arith.constant 0 : index
    %c0_8 = arith.constant 0 : index
    %6 = vector.load %arg5[%c0_7, %c0_8] : memref<4x8xf32, #tpu.memory_space<vmem>>, vector<4x8xf32>
    %cst_9 = arith.constant dense<0.000000e+00> : vector<4x256xf32>
    %7 = tpu.matmul %6, %3, %cst_9 {dimension_numbers = #tpu.dot_dimension_numbers<[1], [0], [0], [1], [0, 0, 1, 1], [], []>} : vector<4x8xf32>, vector<8x256xf32>, vector<4x256xf32> -> vector<4x256xf32>
    %8 = arith.addf %5, %7 : vector<4x256xf32>
    %c0_10 = arith.constant 0 : index
    %c0_11 = arith.constant 0 : index
    %9 = vector.load %arg6[%c0_10, %c0_11] : memref<4x1xf32, #tpu.memory_space<vmem>>, vector<4x1xf32>
    %10 = vector.broadcast %9 : vector<4x1xf32> to vector<4x256xf32>
    %11 = arith.addf %8, %10 : vector<4x256xf32>
    %cst_12 = arith.constant 0.000000e+00 : f32
    %12 = vector.broadcast %cst_12 : f32 to vector<4x256xf32>
    %13 = arith.maximumf %11, %12 : vector<4x256xf32>
    %c0_13 = arith.constant 0 : index
    %c0_14 = arith.constant 0 : index
    %14 = vector.load %arg7[%c0_13, %c0_14] : memref<4x1xf32, #tpu.memory_space<vmem>>, vector<4x1xf32>
    %15 = vector.broadcast %14 : vector<4x1xf32> to vector<4x256xf32>
    %16 = arith.mulf %13, %15 : vector<4x256xf32>
    %cst_15 = arith.constant dense<0.000000e+00> : vector<256xf32>
    %17 = vector.multi_reduction <add>, %16, %cst_15 [0] : vector<4x256xf32> to vector<256xf32>
    %18 = vector.shape_cast %17 : vector<256xf32> to vector<1x256xf32>
    %c0_16 = arith.constant 0 : index
    %c0_17 = arith.constant 0 : index
    %19 = vector.load %arg8[%c0_16, %c0_17] : memref<1x1xf32, #tpu.memory_space<vmem>>, vector<1x1xf32>
    %20 = vector.broadcast %19 : vector<1x1xf32> to vector<1x256xf32>
    %21 = arith.addf %18, %20 : vector<1x256xf32>
    %22 = arith.negf %21 : vector<1x256xf32>
    %23 = math.exp %22 : vector<1x256xf32>
    %cst_18 = arith.constant 1.000000e+00 : f32
    %24 = vector.broadcast %cst_18 : f32 to vector<1x256xf32>
    %25 = arith.addf %24, %23 : vector<1x256xf32>
    %26 = arith.divf %24, %25 : vector<1x256xf32>
    %27 = vector.broadcast %26 : vector<1x256xf32> to vector<4x256xf32>
    %28 = arith.mulf %1, %27 : vector<4x256xf32>
    %c0_19 = arith.constant 0 : index
    %c0_20 = arith.constant 0 : index
    %c0_21 = arith.constant 0 : index
    %29 = vector.load %arg9[%c0_19, %c0_20, %c0_21] : memref<1x4x256xf32, #tpu.memory_space<vmem>>, vector<1x4x256xf32>
    %30 = vector.shape_cast %29 : vector<1x4x256xf32> to vector<4x256xf32>
    %31 = vector.shape_cast %28 : vector<4x256xf32> to vector<1x4x256xf32>
    tpu.vector_store %arg9[%c0_19, %c0_20, %c0_21], %31 {strides = array<i32>} : memref<1x4x256xf32, #tpu.memory_space<vmem>>, vector<1x4x256xf32>,
    return
  }
  func.func @transform_0(%arg0: i32, %arg1: i32) -> (i32, i32, i32) {
    %c0_i32 = arith.constant 0 : i32
    %c0_i32_0 = arith.constant 0 : i32
    return %arg1, %c0_i32, %arg0 : i32, i32, i32
  }
  func.func @transform_1(%arg0: i32, %arg1: i32) -> (i32, i32, i32) {
    %c0_i32 = arith.constant 0 : i32
    %c0_i32_0 = arith.constant 0 : i32
    return %arg1, %c0_i32, %arg0 : i32, i32, i32
  }
  func.func @transform_2(%arg0: i32, %arg1: i32) -> (i32, i32) {
    %c0_i32 = arith.constant 0 : i32
    %c0_i32_0 = arith.constant 0 : i32
    %c0_i32_1 = arith.constant 0 : i32
    return %c0_i32, %c0_i32_0 : i32, i32
  }
  func.func @transform_3(%arg0: i32, %arg1: i32) -> (i32, i32) {
    %c0_i32 = arith.constant 0 : i32
    %c0_i32_0 = arith.constant 0 : i32
    %c0_i32_1 = arith.constant 0 : i32
    return %c0_i32, %c0_i32_0 : i32, i32
  }
  func.func @transform_4(%arg0: i32, %arg1: i32) -> (i32, i32) {
    %c0_i32 = arith.constant 0 : i32
    %c0_i32_0 = arith.constant 0 : i32
    %c0_i32_1 = arith.constant 0 : i32
    return %c0_i32, %c0_i32_0 : i32, i32
  }
  func.func @transform_5(%arg0: i32, %arg1: i32) -> (i32, i32) {
    %c0_i32 = arith.constant 0 : i32
    %c0_i32_0 = arith.constant 0 : i32
    %c0_i32_1 = arith.constant 0 : i32
    return %c0_i32, %c0_i32_0 : i32, i32
  }
  func.func @transform_6(%arg0: i32, %arg1: i32) -> (i32, i32) {
    %c0_i32 = arith.constant 0 : i32
    %c0_i32_0 = arith.constant 0 : i32
    %c0_i32_1 = arith.constant 0 : i32
    return %c0_i32, %c0_i32_0 : i32, i32
  }
  func.func @transform_7(%arg0: i32, %arg1: i32) -> (i32, i32, i32) {
    %c0_i32 = arith.constant 0 : i32
    %c0_i32_0 = arith.constant 0 : i32
    return %arg1, %c0_i32, %arg0 : i32, i32, i32
  }
}

</mosaic_0001>

<bundles_post_ra>
// kernel: tpu_custom_call.1
= control target key start
LH: loop header
LB: loop body
LE: loop exit
PB: predicated region body
PF: predicated region fallthrough
CT: control target
= control target key end

     0   :  { %s1199_s0 = inlined_call_operand.hbm [shape: f32[2,4,256], index: 0, kind: input, shape index: {}]   ;;  %s1200_s1 = inlined_call_operand.hbm [shape: f32[2,8,256], index: 1, kind: input, shape index: {}]   ;;  %s1201_s2 = inlined_call_operand.vmem [shape: f32[4,4], index: 2, kind: input, shape index: {}]   ;;  %s1202_s3 = inlined_call_operand.vmem [shape: f32[4,8], index: 3, kind: input, shape index: {}]   ;;  %s1203_s4 = inlined_call_operand.vmem [shape: f32[4,1], index: 4, kind: input, shape index: {}]   ;;  %s1204_s5 = inlined_call_operand.vmem [shape: f32[4,1], index: 5, kind: input, shape index: {}]   ;;  %s1205_s6 = inlined_call_operand.<no memory space> [shape: f32[1,1], index: 6, kind: input, shape index: {}]   ;;  %s1206_s7 = inlined_call_operand.hbm [shape: f32[2,4,256], index: 7, kind: output, shape index: {}]  }
   0x1   :  { %1208 = sst [smem:[#allocation13_spill]] %s1199_s0  ;;  %v12_v0 = vstv %s1205_s6 }
   0x2   :  { %13 = vst [vmem:[#allocation2] sm:$0x1] %v12_v0 }
   0x3   :  { %14 = vsyncpa [#allocation4], 0 }
   0x4   :  { %16 = vsyncpa [#allocation4 + $0x1], 0 }
   0x5   :  { %17 = vsyncpa [#allocation7], 0 }
   0x6   :  { %19 = vsyncpa [#allocation7 + $0x1], 0 }
   0x7   :  { %20 = vsyncpa [#allocation5], 0 }
   0x8   :  { %22 = vsyncpa [#allocation5 + $0x1], 0  ;;  %s1009_s26 = smov 0   ;;  %s1011_s27 = smov 0  }
   0x9   :  { %s1013_s28 = smov 0   ;;  %s1015_s29 = smov 0  }
   0xa   :  { %s1017_s30 = smov 0   ;;  %s1019_s8 = smov 0  }
   0xb LB: > { %s711_s6 = sadd.s32 4294967295, %s959_s8   ;;  %s712_s9 = sadd.s32 4294967294, %s959_s8   ;;  %s959_s8 = sphi %s1019_s8, %s28_s8   ;;  %s955_s30 = sphi %s1017_s30, %s1223_s30   ;;  %s951_s29 = sphi %s1015_s29, %s1222_s29   ;;  %s947_s28 = sphi %s1013_s28, %s1221_s28   ;;  %s943_s27 = sphi %s1011_s27, %s1220_s27   ;;  %s939_s26 = sphi %s1009_s26, %s1219_s26  }
   0xc   : > { %s37_s10 = sadd.s32 1, %s955_s30  ;;  %s49_s11 = sadd.s32 1, %s947_s28 }
   0xd   : > { %p38_p0 = scmp.ge.s32.totalorder %s37_s10, 2  ;;  %p56_p1 = scmp.ne.s32.totalorder %s947_s28, %s943_s27 }
   0xe   : > { %p57_p2 = scmp.eq.s32.totalorder %s959_s8, 0  ;;  %p62_p3 = scmp.ne.s32.totalorder %s943_s27, %s939_s26 }
   0xf   : > { %s1225_s10 = smov (%p38_p0, %s37_s10), 0  ;;  %p63_p5 = scmp.eq.s32.totalorder %s711_s6, 0 }
  0x10   : > { %1209 = sst [smem:[#allocation12_spill]] %s1225_s10  ;;  %p1050_p4 = por %p57_p2, %p56_p1 }
  0x11   : > { %s44_s13 = ssub.s32 %s955_s30, %s1225_s10  ;;  %p221_p6 = scmp.eq.s32.totalorder %s711_s6, 1 }
  0x12   : > { %p47_p7 = scmp.eq.s32.totalorder %s44_s13, 0  ;;  %p1056_p8 = por %p63_p5, %p62_p3 }
  0x13   : > { %p1060_p9 = por %p221_p6, %p56_p1  ;;  %p227_p10 = scmp.eq.s32.totalorder %s712_s9, 1 }
  0x14   : > { %s1065_s16 = scalar_select %p47_p7, %s947_s28, %s49_s11  }
  0x15   : > { %p1067_p11 = por %p227_p10, %p62_p3  ;;  %p756_p13 = scmp.lt.s32.totalorder %s959_s8, 2 }
  0x16   : > { %s1074_s18 = sand.u32 1, %s947_s28   ;;  %s736_s20 = sshll.u32 %s955_s30, 7 }
  0x17   : > { %s715_s19 = sshll.u32 %s1074_s18, 3  ;;  %s1214_s0 = sld [smem:[#allocation13_spill]] }
  0x18   : > { %s266_s24 = scalar_lea.vmem [#allocation3], %s715_s19  ;;  %p1083_p0 = pnand %p756_p13, %p1050_p4 }
  0x19   : > { %s276_s25 = sshll.u32 %s266_s24, 4  ;;  %p721_p1 = scmp.ge.s32.totalorder %s959_s8, 1  ;;  %s277_s25 = int_to_ptr.vmem [resolvable:$true] %s276_s25 }
  0x1a   : > { %p302_p2 = scmp.lt.s32.totalorder %s959_s8, 3  ;;  %s263_s9 = scalar_lea.sflag [#allocation4], %s1074_s18 }
  0x1b   : > { %p821_p3 = pneg %p1083_p0  ;;  %s832_s11 = scalar_lea.vmem %s277_s25, 128 }
  0x1c   : > { %p833_p5 = scmp.ne.s32.totalorder %s277_s25, %s832_s11  ;;  %s961_s13 = smov [#allocation3]  }
  0x1d   : > { %s274_s23 = scalar_lea.hbm %s1214_s0, %s736_s20  ;;  %s837_s19 = sshll.u32 %s961_s13, 4  ;;  %s838_s19 = int_to_ptr.vmem [resolvable:$false] %s837_s19 }
  0x1e   : > { %p835_p6 = pnand %p833_p5, %p821_p3  ;;  %s839_s12 = scalar_lea.vmem %s838_s19, 256 }
  0x1f   : > { %p840_p4 = scmp.lt.s32.totalorder %s277_s25, %s838_s19  ;;  %p841_p10 = scmp.lt.s32.totalorder %s839_s12, %s832_s11 }
  0x20   : > { %p836_p7 = pneg %p835_p6 }
  0x21   : > { %p842_p13 = por %p841_p10, %p840_p4 }
  0x23   : > { %p843_p12 = pnand %p842_p13, %p836_p7 }
  0x25   : > { %846 = shalt.err (!%p843_p12)
}
  0x26   : > { %748 = dma.hbm_to_vmem [thread:$0]  (!%p1083_p0), %s274_s23, 128, %s277_s25, %s263_s9  }
  0x27   : > { %p1101_p5 = pnand %p721_p1, %p302_p2  ;;  %s718_s21 = sshll.u32 %s1074_s18, 4 }
  0x28   : > { %s737_s22 = sshll.u32 %s955_s30, 8  ;;  %s287_s19 = scalar_lea.vmem [#allocation6], %s718_s21 }
  0x29   : > { %s295_s13 = scalar_lea.hbm %s1200_s1, %s737_s22  ;;  %s297_s12 = sshll.u32 %s287_s19, 4  ;;  %s298_s12 = int_to_ptr.vmem [resolvable:$true] %s297_s12 }
  0x2a   : > { %s284_s0 = scalar_lea.sflag [#allocation7], %s1074_s18  ;;  %s860_s10 = scalar_lea.vmem %s298_s12, 256 }
  0x2b   : > { %p861_p12 = scmp.ne.s32.totalorder %s298_s12, %s860_s10  ;;  %s962_s23 = smov [#allocation6]  }
  0x2c   : > { %s865_s25 = sshll.u32 %s962_s23, 4  ;;  %s866_s25 = int_to_ptr.vmem [resolvable:$false] %s865_s25 }
  0x2d   : > { %p863_p6 = pnand %p861_p12, %p821_p3  ;;  %s867_s9 = scalar_lea.vmem %s866_s25, 512 }
  0x2e   : > { %p868_p1 = scmp.lt.s32.totalorder %s298_s12, %s866_s25  ;;  %p869_p2 = scmp.lt.s32.totalorder %s867_s9, %s860_s10 }
  0x2f   : > { %p864_p7 = pneg %p863_p6 }
  0x30   : > { %p870_p4 = por %p869_p2, %p868_p1 }
  0x32   : > { %p871_p10 = pnand %p870_p4, %p864_p7 }
  0x34   : > { %874 = shalt.err (!%p871_p10)
}
  0x35   : > { %751 = dma.hbm_to_vmem [thread:$0]  (!%p1083_p0), %s295_s13, 256, %s298_s12, %s284_s0  }
  0x36   : > { %306 = sbr.rel (%p1101_p5) target bundleno = 337 (0x151), region = 48  ;;  %s1119_s18 = sand.u32 (!%p1101_p5), 1, %s943_s27  }
  0x37   : > { %s722_s21 = sshll.u32 (!%p1101_p5), %s1119_s18, 3  ;;  %s309_s22 = scalar_lea.sflag (!%p1101_p5), [#allocation4], %s1119_s18 }
  0x38   : > { %s312_s10 = scalar_lea.vmem (!%p1101_p5), [#allocation3], %s722_s21 }
  0x3b   : > { %926 = dma.done.wait (%p1056_p8), %s309_s22, 128  }
  0x3c   : > { %928 = vsyncadd (%p1056_p8), %s309_s22, 4294967168  ;;  %s723_s0 = sshll.u32 %s1119_s18, 4  ;;  %s318_s6 = scalar_lea.sflag [#allocation7], %s1119_s18 }
  0x3d   : > { %s321_s20 = scalar_lea.vmem [#allocation6], %s723_s0 }
  0x3e   : > { %930 = dma.done.wait (%p1056_p8), %s318_s6, 256  }
  0x3f   : > { %932 = vsyncadd (%p1056_p8), %s318_s6, 4294967040  ;;  %v963_v1 = vmov 0.0   ;;  %v964_v2 = vmov 0   ;;  %v362_v3 = vld [vmem:[%s321_s20 + $0x8] sm:$0xff]  ;;  %v361_v4 = vld [vmem:[%s321_s20] sm:$0xff]  ;;  %vm365_vm0 = vcmask 64512   ;;  %v560_v23 = vlaneseq }
  0x40   : > { %433 = vmatprep.mubr.f32.mxu0 %v963_v1  ;;  %515 = vmatprep.mubr.f32.mxu1 %v963_v1  ;;  %v364_v5 = vld [vmem:[%s1202_s3] sm:$0xf]  ;;  %vm446_vm1 = vcmask 1043456   ;;  %vm442_vm2 = vcmask 31744   ;;  %s738_s9 = sshll.u32 %s951_s29, 7  ;;  %s356_s22 = scalar_lea.vmem [#allocation8], %s722_s21 }
  0x41   : > { %808 = vset.pattern.permute.xlu0 %v964_v2  ;;  %809 = vset.pattern.permute.xlu1 %v964_v2  ;;  %v1138_v6 = vld [vmem:[%s312_s10] sm:$0xff]  ;;  %v554_v9 = vld [vmem:[#allocation2] sm:$0x1]  ;;  %v561_v29 = vshrl.u32 %v560_v23, 7  ;;  %s601_s10 = sshll.u32 %s356_s22, 4  ;;  %s599_s20 = scalar_lea.hbm %s1206_s7, %s738_s9  ;;  %s602_s10 = int_to_ptr.vmem [resolvable:$true] %s601_s10 }
  0x42   : > { %399 = vmatprep.subr.mxu0 %v362_v3  ;;  %v522_v7 = vld [vmem:[%s1203_s4] sm:$0xf]  ;;  %v441_v8 = vcombine.high %v1138_v6, %v1138_v6  ;;  %557 = vperm.xlu1 %809, %v554_v9   ;;  %s585_s24 = scalar_lea.sflag [#allocation5], %s1119_s18  ;;  %s875_s11 = scalar_lea.vmem %s602_s10, 128 }
  0x43   : > { %400 = vmatpush1.msra.mxu0 %v361_v4  ;;  %525 = vperm.xlu0 %808, %v522_v7   ;;  %v363_v10 = vld [vmem:[%s1201_s2] sm:$0xf]  ;;  %v562_v35 = vsub.s32 0, %v561_v29  ;;  %p876_p8 = scmp.ne.s32.totalorder %s602_s10, %s875_s11  ;;  %s965_s13 = smov [#allocation8]  }
  0x44   : > { %725 = vmatmul.mubr.msk.f32.vlgmr.msra.gmra.mxu0 %vm365_vm0, %v364_v5  ;;  %v532_v11 = vld [vmem:[%s1204_s5] sm:$0xf]  ;;  %726 = vmatprep.subr.msk.mxu1 %vm446_vm1, %v441_v8  ;;  %s879_s29 = sshll.u32 %s965_s13, 4  ;;  %s880_s29 = int_to_ptr.vmem [resolvable:$false] %s879_s29 }
  0x45   : > { %727 = vmatpush1.msk.msra.mxu1 %vm446_vm1, %v1138_v6  ;;  %p877_p0 = pnand %p876_p8, %p1060_p9  ;;  %s881_s21 = scalar_lea.vmem %s880_s29, 256 }
  0x46   : > { %728 = vmatmul.mubr.msk.f32.vlgmr.msra.gmra.mxu1 %vm442_vm2, %v363_v10  ;;  %p882_p13 = scmp.lt.s32.totalorder %s602_s10, %s880_s29  ;;  %p883_p5 = scmp.lt.s32.totalorder %s881_s21, %s875_s11 }
  0x47   : > { %535 = vperm.xlu0 %808, %v532_v11   ;;  %p878_p3 = pneg %p877_p0 }
  0x48   : > { %p884_p12 = por %p883_p5, %p882_p13 }
  0x4a   : > { %p885_p6 = pnand %p884_p12, %p878_p3 }
  0xbd   : > { %v558_v36 = vpop.permute.xlu1 %557 }
  0xbe   : > { %v526_v13 = vpop.permute.xlu0 %525  ;;  %v563_v41 = vrot.slane %v558_v36, %v562_v35 }
  0xc2   : > { %v536_v22 = vpop.permute.xlu0 %535 }
 0x104   : > { %v435_v12 = vpop.f32.mrf.mxu0 }
 0x106   : > { %v517_v14 = vpop.f32.mrf.mxu1  ;;  %v437_v16 = vpop.f32.mrf.mxu0 }
 0x107   : > { %v518_v15 = vadd.f32 %v517_v14, %v435_v12 }
 0x108   : > { %v519_v17 = vpop.f32.mrf.mxu1 }
 0x109   : > { %v528_v18 = vadd.f32 %v526_v13, %v518_v15  ;;  %v520_v19 = vadd.f32 %v519_v17, %v437_v16 }
 0x10b   : > { %v529_v20 = vadd.f32 %v526_v13, %v520_v19  ;;  %v530_v21 = vmax.f32 %v528_v18, 0.0 }
 0x10d   : > { %v531_v24 = vmax.f32 %v529_v20, 0.0  ;;  %v538_v25 = vmul.f32 %v536_v22, %v530_v21 }
 0x10f   : > { %v539_v26 = vmul.f32 %v536_v22, %v531_v24  ;;  %v540_v27 = vsel %vm446_vm1, %v538_v25, 0.0 }
 0x110   : > { %v541_v28 = vrot.slane %v540_v27, 4 }
 0x111   : > { %v547_v30 = vsel %vm446_vm1, %v539_v26, 0.0 }
 0x112   : > { %v542_v31 = vadd.f32 %v541_v28, %v540_v27  ;;  %v548_v32 = vrot.slane %v547_v30, 4 }
 0x114   : > { %v543_v33 = vrot.slane %v542_v31, 2  ;;  %v549_v34 = vadd.f32 %v548_v32, %v547_v30 }
 0x116   : > { %v544_v37 = vadd.f32 %v543_v33, %v542_v31  ;;  %v550_v38 = vrot.slane %v549_v34, 2 }
 0x118   : > { %v551_v39 = vadd.f32 %v550_v38, %v549_v34  ;;  %v545_v40 = vrot.slane %v544_v37, 1 }
 0x11a   : > { %v546_v42 = vadd.f32 %v545_v40, %v544_v37  ;;  %v552_v43 = vrot.slane %v551_v39, 1 }
 0x11c   : > { %v553_v44 = vadd.f32 %v552_v43, %v551_v39  ;;  %v564_v45 = vadd.f32 %v563_v41, %v546_v42 }
 0x11e   : > { %v565_v46 = vadd.f32 %v563_v41, %v553_v44  ;;  %v729_v47 = vmul.f32 -1.442695, %v564_v45 }
 0x120   : > { %811 = vpow2.f32 %v729_v47  ;;  %v730_v48 = vmul.f32 -1.442695, %v565_v46 }
 0x122   : > { %813 = vpow2.f32 %v730_v48 }
 0x12d   : > { %v812_v49 = vpop.eup %811 }
 0x12e   : > { %v572_v50 = vadd.f32 1.0, %v812_v49 }
 0x12f   : > { %v814_v51 = vpop.eup %813 }
 0x130   : > { %v573_v52 = vadd.f32 1.0, %v814_v51  ;;  %815 = vrcp.f32 %v572_v50 }
 0x132   : > { %817 = vrcp.f32 %v573_v52 }
 0x13d   : > { %v816_v53 = vpop.eup %815 }
 0x13f   : > { %v818_v54 = vpop.eup %817 }
 0x140   : > { %v580_v55 = vcombine.low %v816_v53, %v818_v54 }
 0x142   : > { %v582_v56 = vmul.f32 %v580_v55, %v1138_v6 }
 0x144   : > { %583 = vst [vmem:[%s356_s22] sm:$0xff] %v582_v56 }
 0x145   : > { %888 = shalt.err (!%p885_p6)
}
 0x146   : > { %s889_s14 = scalar_lea.hbm %s599_s20, 128  ;;  %s893_s12 = scalar_lea.hbm %s1206_s7, 256 }
 0x147   : > { %p890_p7 = scmp.ne.s32.totalorder %s599_s20, %s889_s14  ;;  %p894_p4 = scmp.lt.s32.totalorder %s599_s20, %s1206_s7 }
 0x148   : > { %p895_p10 = scmp.lt.s32.totalorder %s893_s12, %s889_s14 }
 0x149   : > { %p891_p1 = pnand %p890_p7, %p1060_p9 }
 0x14a   : > { %p896_p8 = por %p895_p10, %p894_p4 }
 0x14b   : > { %p892_p2 = pneg %p891_p1 }
 0x14d   : > { %p897_p0 = pnand %p896_p8, %p892_p2 }
 0x14f   : > { %900 = shalt.err (!%p897_p0)
}
 0x150   : > { %743 = dma.vmem_to_hbm [thread:$0]  (%p1060_p9), %s602_s10, 128, %s599_s20, %s585_s24  }
 0x151 PF: > { %s613_s9 = sand.u32 1, %s939_s26   ;;  %p1217_p3 = scmp.ge.s32.totalorder %s959_s8, 2 }
 0x152   : > { %s614_s22 = scalar_lea.sflag [#allocation5], %s613_s9 }
 0x153   : > { %p753_p13 = pnand %p1217_p3, %p1067_p11 }
 0x155   : > { %p754_p5 = pneg %p753_p13 }
 0x157   : > { %934 = dma.done.wait (%p754_p5), %s614_s22, 128  }
 0x158   : > { %936 = vsyncadd (%p754_p5), %s614_s22, 4294967168  ;;  %s28_s8 = sadd.s32 1, %s959_s8   ;;  %s1218_s15 = sld [smem:[#allocation12_spill]] }
 0x159   : > { %p25_p12 = scmp.ge.s32.totalorder %s28_s8, 4   ;;  %s1219_s26 = smov %s943_s27 }
 0x15a   : > { %s1220_s27 = smov %s947_s28  ;;  %s1221_s28 = smov %s1065_s16 }
 0x15b   : > { %s1222_s29 = smov %s955_s30  ;;  %27 = sbr.rel (!%p25_p12) target bundleno = 11 (0xb), region = 106 }
 0x15e   : > { %s1223_s30 = smov %s1218_s15 }
 0x160   :  { %619 = vsyncpa [#allocation4], 1 }
 0x161   :  { %621 = vsyncpa [#allocation4 + $0x1], 1 }
 0x162   :  { %622 = vsyncpa [#allocation7], 1 }
 0x163   :  { %624 = vsyncpa [#allocation7 + $0x1], 1 }
 0x164   :  { %625 = vsyncpa [#allocation5], 1 }
 0x165   :  { %627 = vsyncpa [#allocation5 + $0x1], 1 }

</bundles_post_ra>
